<compile_context>
chip_gen: v7x
topology: tpu7x:2x2x1
jax: 0.10.0
libtpu: 0.0.40
codegen_flags: <defaults>
</compile_context>

<pallas_src>
import jax
import jax.numpy as jnp
import numpy as np
from jax.experimental import pallas as pl
from jax.experimental.pallas import tpu as pltpu

_LANES = 128


def _uncond_disc_kernel(x_ref, w_ref, b_ref, o_ref):
    # x_ref : [R, 128] f32 VMEM  (flattened input, lane-dense)
    # w_ref : [R, 128] f32 VMEM  (flattened conv weight, same flattening order)
    # b_ref : [1]      f32 SMEM  (conv bias)
    # o_ref : [1, 1]   f32 VMEM  (flattened module output)
    prod = x_ref[...] * w_ref[...]                      # one VPU multiply, full lanes
    row = jnp.sum(prod, axis=1, keepdims=True)          # lane reduce (XLU) -> [R, 1]
    tot = jnp.sum(row, axis=0, keepdims=True)           # sublane reduce    -> [1, 1]
    o_ref[...] = tot + b_ref[0]


def uncond_discriminator_forward(x, weight, bias):
    """Forward pass of UncondDiscriminator.

    Args:
      x      : [8*in_chans, 4, 4]      input tensor (any float dtype, promoted to f32)
      weight : [1, 8*in_chans, 4, 4]   Conv2d weight (PyTorch layout [out_ch, in_ch, kH, kW])
      bias   : [1]                     Conv2d bias
    Returns:
      [1, 1] f32 output (Conv2d(k=4,s=4,p=0) applied to the 4x4 input, then Flatten).
    """
    C, H, W = x.shape
    assert (H, W) == (4, 4), "UncondDiscriminator expects a 4x4 spatial input"
    assert weight.shape == (1, C, 4, 4)

    n = C * H * W                                  # = 128 * in_chans (always lane-aligned here)
    pad = (-n) % _LANES                            # general-case guard; 0 for this module
    x_flat = x.astype(jnp.float32).reshape(-1)
    w_flat = weight.astype(jnp.float32).reshape(-1)   # same (c,h,w) flattening order as x
    if pad:
        x_flat = jnp.pad(x_flat, (0, pad))
        w_flat = jnp.pad(w_flat, (0, pad))
    rows = (n + pad) // _LANES
    x2 = x_flat.reshape(rows, _LANES)              # contiguous reshape: no data movement
    w2 = w_flat.reshape(rows, _LANES)

    out = pl.pallas_call(
        _uncond_disc_kernel,
        out_shape=jax.ShapeDtypeStruct((1, 1), jnp.float32),
        in_specs=[
            pl.BlockSpec(memory_space=pltpu.MemorySpace.VMEM),   # x tile  [rows, 128]
            pl.BlockSpec(memory_space=pltpu.MemorySpace.VMEM),   # w tile  [rows, 128]
            pl.BlockSpec(memory_space=pltpu.MemorySpace.SMEM),   # bias scalar
        ],
        out_specs=pl.BlockSpec(memory_space=pltpu.MemorySpace.VMEM),
    )(x2, w2, bias.astype(jnp.float32))
    return out


def _ref_uncond_discriminator(x, weight, bias):
    """Pure-numpy reference: Conv2d(8*in_chans, 1, k=4, s=4, p=0) on [C,4,4] + Flatten."""
    x = np.asarray(x, np.float32)
    weight = np.asarray(weight, np.float32)
    bias = np.asarray(bias, np.float32)
    val = np.sum(x * weight[0]) + bias[0]          # conv output [1,1,1] -> flatten -> [1,1]
    return np.array([[val]], dtype=np.float32)


if __name__ == "__main__":
    in_chans = 4
    C = 8 * in_chans          # 32 input channels, as the module's forward expects
    H = W = 4

    key = jax.random.PRNGKey(0)
    kx, kw, kb = jax.random.split(key, 3)

    # Deterministic synthetic parameters (shapes from nn.Conv2d(8*in_chans, 1, 4, 4, 0)).
    fan_in = C * 4 * 4
    bound = 1.0 / np.sqrt(fan_in)
    x = jax.random.normal(kx, (C, H, W), dtype=jnp.float32)
    weight = jax.random.uniform(kw, (1, C, 4, 4), dtype=jnp.float32,
                                minval=-bound, maxval=bound)
    bias = jax.random.uniform(kb, (1,), dtype=jnp.float32,
                              minval=-bound, maxval=bound)

    out = uncond_discriminator_forward(x, weight, bias)
    out = jax.block_until_ready(out)

    ref = _ref_uncond_discriminator(np.asarray(x), np.asarray(weight), np.asarray(bias))
    assert out.shape == (1, 1), out.shape
    np.testing.assert_allclose(np.asarray(out), ref, rtol=1e-5, atol=1e-5)

    print("KERNEL_OK")
</pallas_src>

<mosaic_0001>
module attributes {stable_mosaic.version = 11 : i64} {
  func.func @_uncond_disc_kernel(%arg0: memref<4x128xf32, #tpu.memory_space<vmem>>, %arg1: memref<4x128xf32, #tpu.memory_space<vmem>>, %arg2: memref<1xf32, #tpu.memory_space<smem>>, %arg3: memref<1x1xf32, #tpu.memory_space<vmem>>) attributes {dimension_semantics = [], scalar_prefetch = 0 : i64, scratch_operands = 0 : i64, tpu.core_type = #tpu.core_type<tc>} {
    %c0 = arith.constant 0 : index
    %c0_0 = arith.constant 0 : index
    %0 = vector.load %arg0[%c0, %c0_0] : memref<4x128xf32, #tpu.memory_space<vmem>>, vector<4x128xf32>
    %c0_1 = arith.constant 0 : index
    %c0_2 = arith.constant 0 : index
    %1 = vector.load %arg1[%c0_1, %c0_2] : memref<4x128xf32, #tpu.memory_space<vmem>>, vector<4x128xf32>
    %2 = arith.mulf %0, %1 : vector<4x128xf32>
    %cst = arith.constant dense<0.000000e+00> : vector<4xf32>
    %3 = vector.multi_reduction <add>, %2, %cst [1] : vector<4x128xf32> to vector<4xf32>
    %4 = vector.shape_cast %3 : vector<4xf32> to vector<4x1xf32>
    %cst_3 = arith.constant dense<0.000000e+00> : vector<1xf32>
    %5 = vector.multi_reduction <add>, %4, %cst_3 [0] : vector<4x1xf32> to vector<1xf32>
    %6 = vector.shape_cast %5 : vector<1xf32> to vector<1x1xf32>
    %c0_4 = arith.constant 0 : index
    %7 = memref.load %arg2[%c0_4] : memref<1xf32, #tpu.memory_space<smem>>
    %8 = vector.broadcast %7 : f32 to vector<1x1xf32>
    %9 = arith.addf %6, %8 : vector<1x1xf32>
    %c0_5 = arith.constant 0 : index
    %c0_6 = arith.constant 0 : index
    %10 = vector.load %arg3[%c0_5, %c0_6] : memref<1x1xf32, #tpu.memory_space<vmem>>, vector<1x1xf32>
    tpu.vector_store %arg3[%c0_5, %c0_6], %9 {strides = array<i32>} : memref<1x1xf32, #tpu.memory_space<vmem>>, vector<1x1xf32>,
    return
  }
}

</mosaic_0001>

<bundles_post_ra>
// kernel: tpu_custom_call.1
= control target key start
LH: loop header
LB: loop body
LE: loop exit
PB: predicated region body
PF: predicated region fallthrough
CT: control target
= control target key end

     0   :  { %9 = vsyncpa [#allocation4], 0  ;;  %s164_s0 = inlined_call_operand.hbm [shape: f32[4,128], index: 0, kind: input, shape index: {}]   ;;  %s165_s1 = inlined_call_operand.vmem [shape: f32[4,128], index: 1, kind: input, shape index: {}]   ;;  %s166_s2 = inlined_call_operand.<no memory space> [shape: f32[1], index: 2, kind: input, shape index: {}]   ;;  %s167_s3 = inlined_call_operand.hbm [shape: f32[1,1], index: 3, kind: output, shape index: {}]  }
   0x1   :  { %10 = vsyncpa [#allocation5], 0  ;;  %s112_s12 = smov [#allocation3]   ;;  %s64_s16 = scalar_lea.hbm %s164_s0, 64 }
   0x2   :  { %s17_s13 = sshll.u32 %s112_s12, 4  ;;  %p65_p0 = scmp.ne.s32.totalorder %s164_s0, %s64_s16  ;;  %s18_s13 = int_to_ptr.vmem [resolvable:$true] %s17_s13 }
   0x3   :  { %p68_p1 = scmp.lt.u32.totalorder %s64_s16, %s164_s0 }
   0x5   :  { %p70_p2 = pnand %p68_p1, %p65_p0 }
   0x7   :  { %73 = shalt.err (!%p70_p2)
}
   0x8   :  { %s74_s21 = scalar_lea.vmem %s18_s13, 64  ;;  %p79_p4 = scmp.lt.s32.totalorder %s18_s13, %s18_s13 }
   0x9   :  { %p75_p3 = scmp.ne.s32.totalorder %s18_s13, %s74_s21  ;;  %p80_p5 = scmp.lt.s32.totalorder %s74_s21, %s74_s21 }
   0xb   :  { %p81_p6 = por %p80_p5, %p79_p4 }
   0xd   :  { %p82_p7 = pnand %p81_p6, %p75_p3 }
   0xf   :  { %85 = shalt.err (!%p82_p7)
}
  0x10   :  { %20 = dma.hbm_to_vmem [thread:$0]  %s164_s0, 64, %s18_s13, [#allocation4]  }
  0x11   :  { %108 = dma.done.wait [#allocation4], 64  }
  0x12   :  { %109 = vsyncadd [#allocation4], 4294967232  ;;  %v28_v0 = vld [vmem:[#allocation3] sm:$0xf]  ;;  %vm31_vm0 = vcmask 1043456   ;;  %v43_v11 = vstv %s166_s2  ;;  %s113_s27 = smov [#allocation6]  }
  0x13   :  { %v29_v1 = vld [vmem:[%s165_s1] sm:$0xf]  ;;  %s53_s28 = sshll.u32 %s113_s27, 4  ;;  %vm45_vm1 = vcmask 0   ;;  %s54_s28 = int_to_ptr.vmem [resolvable:$true] %s53_s28 }
  0x14   :  { %v30_v2 = vmul.f32 %v29_v1, %v28_v0  ;;  %s86_s1 = scalar_lea.vmem %s54_s28, 16  ;;  %s90_s29 = scalar_lea.vmem %s54_s28, 32 }
  0x15   :  { %p87_p8 = scmp.ne.s32.totalorder %s54_s28, %s86_s1  ;;  %p91_p9 = scmp.lt.s32.totalorder %s54_s28, %s54_s28 }
  0x16   :  { %v32_v3 = vsel %vm31_vm0, %v30_v2, 0.0  ;;  %p92_p10 = scmp.lt.s32.totalorder %s90_s29, %s86_s1 }
  0x17   :  { %33 = vadd.xlane.f32.xlu0 %v32_v3 }
  0x18   :  { %p93_p11 = por %p92_p10, %p91_p9 }
  0x1a   :  { %p94_p12 = pnand %p93_p11, %p87_p8 }
  0xa4   :  { %v34_v4 = vpop.xlane.xlu0 %33 }
  0xa5   :  { %v35_v5 = vsel %vm31_vm0, %v34_v4, 0.0 }
  0xa6   :  { %v36_v6 = vrot.slane %v35_v5, 4 }
  0xa8   :  { %v37_v7 = vadd.f32 %v36_v6, %v35_v5 }
  0xaa   :  { %v38_v8 = vrot.slane %v37_v7, 2 }
  0xac   :  { %v39_v9 = vadd.f32 %v38_v8, %v37_v7 }
  0xae   :  { %v40_v10 = vrot.slane %v39_v9, 1 }
  0xb0   :  { %v41_v12 = vadd.f32 %v40_v10, %v39_v9 }
  0xb2   :  { %v44_v13 = vadd.f32 %v43_v11, %v41_v12 }
  0xb4   :  { %46 = vst.msk [vmem:[#allocation6] sm:$0x1] %vm45_vm1, %v44_v13 }
  0xb5   :  { %97 = shalt.err (!%p94_p12)
}
  0xb6   :  { %s98_s5 = scalar_lea.hbm %s167_s3, 16 }
  0xb7   :  { %p99_p13 = scmp.ne.s32.totalorder %s167_s3, %s98_s5  ;;  %p102_p0 = scmp.lt.u32.totalorder %s98_s5, %s167_s3 }
  0xb9   :  { %p104_p1 = pnand %p102_p0, %p99_p13 }
  0xbb   :  { %107 = shalt.err (!%p104_p1)
}
  0xbc   :  { %56 = dma.vmem_to_hbm [thread:$0]  %s54_s28, 16, %s167_s3, [#allocation5]  }
  0xbd   :  { %110 = dma.done.wait [#allocation5], 16  }
  0xbe   :  { %111 = vsyncadd [#allocation5], 4294967280 }
  0xbf   :  { %60 = vsyncpa [#allocation4], 1 }
  0xc0   :  { %61 = vsyncpa [#allocation5], 1 }

</bundles_post_ra>
